<compile_context>
chip_gen: v7x
topology: tpu7x:2x2x1
jax: 0.10.0
libtpu: 0.0.40
codegen_flags: <defaults>
</compile_context>

<pallas_src>
import jax
import jax.numpy as jnp
from jax.experimental import pallas as pl
from jax.experimental.pallas import tpu as pltpu


def _identity_kernel(hi_ref, out_ref):
    # Pure pass-through: copy the (aliased) input tile to the output tile.
    out_ref[...] = hi_ref[...]


def identity_resolver(lower_level: jax.Array, higher_level: jax.Array) -> jax.Array:
    """Pallas equivalent of IdentityResolver.forward.

    Args:
      lower_level:  (B, C_in, N)  — ignored, kept for API parity.
      higher_level: (B, C_out, M) — returned unchanged.

    Returns:
      Array equal to `higher_level` (same shape and dtype).
    """
    del lower_level  # unused by the Identity resolver, matching PyTorch semantics

    orig_shape = higher_level.shape
    orig_dtype = higher_level.dtype
    total = higher_level.size
    itemsize = jnp.dtype(orig_dtype).itemsize

    # ---- Lane-dense reshape: last dim = 128 lanes whenever possible. ----
    lanes = 128
    if total % lanes == 0:
        rows, cols = total // lanes, lanes
    else:
        # Fall back to a single full-extent block (always a legal block shape).
        rows, cols = 1, total
    x2d = higher_level.reshape(rows, cols)

    # ---- Pick the largest row tile that keeps per-block bytes <= ~4 MiB. ----
    # (2 double-buffered input bufs + 2 output bufs) * 4 MiB = 16 MiB << 32 MiB
    # scoped VMEM on all of v5e / v6e / v7x.
    max_block_bytes = 4 * 1024 * 1024
    bytes_per_row = max(1, cols * itemsize)
    rows_fit = max(1, max_block_bytes // bytes_per_row)
    tile_rows = min(rows, rows_fit)
    tile_rows = max(8, (tile_rows // 8) * 8)  # sublane-aligned
    if tile_rows >= rows or rows % tile_rows != 0:
        tile_rows = rows  # single block covering the full array: always legal

    grid = (rows // tile_rows,)

    out2d = pl.pallas_call(
        _identity_kernel,
        out_shape=jax.ShapeDtypeStruct((rows, cols), orig_dtype),
        grid=grid,
        in_specs=[pl.BlockSpec((tile_rows, cols), lambda i: (i, 0))],
        out_specs=pl.BlockSpec((tile_rows, cols), lambda i: (i, 0)),
        # Output aliases the input buffer: the pass-through does not allocate
        # or fill a second HBM buffer.
        input_output_aliases={0: 0},
        compiler_params=pltpu.CompilerParams(
            dimension_semantics=("parallel",),  # lets v7x shard steps across its 2 TCs
        ),
    )(x2d)

    return out2d.reshape(orig_shape)


if __name__ == "__main__":
    key = jax.random.PRNGKey(0)
    k_lo, k_hi = jax.random.split(key)

    B, C_in, N = 2, 4, 8      # lower_level (ignored)
    C_out, M = 4, 16          # higher_level (passed through)
    embed_dim = C_out         # module __init__ arg; no parameters are created

    lower_level = jax.random.normal(k_lo, (B, C_in, N), dtype=jnp.float32)
    higher_level = jax.random.normal(k_hi, (B, C_out, M), dtype=jnp.float32)

    # Snapshot expected values on host before the (aliasing) kernel runs.
    expected = jax.device_get(higher_level)

    out = identity_resolver(lower_level, higher_level)
    out = jax.block_until_ready(out)

    assert out.shape == (B, C_out, M)
    assert out.dtype == jnp.float32
    assert bool(jnp.array_equal(out, expected))

    print("KERNEL_OK")
</pallas_src>

<mosaic_0001>
module attributes {stable_mosaic.version = 11 : i64} {
  func.func @_identity_kernel(%arg0: i32, %arg1: memref<1x128xf32, #tpu.memory_space<vmem>>, %arg2: memref<1x128xf32, #tpu.memory_space<vmem>>) attributes {dimension_semantics = [#tpu.dimension_semantics<parallel>], iteration_bounds = array<i64: 1>, scalar_prefetch = 0 : i64, scratch_operands = 0 : i64, tpu.core_type = #tpu.core_type<tc>, window_params = [{transform_indices = @transform_0, window_bounds = array<i64: 1, 128>}, {transform_indices = @transform_1, window_bounds = array<i64: 1, 128>}]} {
    %c0 = arith.constant 0 : index
    %c0_0 = arith.constant 0 : index
    %0 = vector.load %arg1[%c0, %c0_0] : memref<1x128xf32, #tpu.memory_space<vmem>>, vector<1x128xf32>
    %c0_1 = arith.constant 0 : index
    %c0_2 = arith.constant 0 : index
    %1 = vector.load %arg2[%c0_1, %c0_2] : memref<1x128xf32, #tpu.memory_space<vmem>>, vector<1x128xf32>
    tpu.vector_store %arg2[%c0_1, %c0_2], %0 {strides = array<i32>} : memref<1x128xf32, #tpu.memory_space<vmem>>, vector<1x128xf32>,
    return
  }
  func.func @transform_0(%arg0: i32) -> (i32, i32) {
    %c0_i32 = arith.constant 0 : i32
    %c0_i32_0 = arith.constant 0 : i32
    return %arg0, %c0_i32 : i32, i32
  }
  func.func @transform_1(%arg0: i32) -> (i32, i32) {
    %c0_i32 = arith.constant 0 : i32
    %c0_i32_0 = arith.constant 0 : i32
    return %arg0, %c0_i32 : i32, i32
  }
}

</mosaic_0001>

<bundles_post_ra>
// kernel: tpu_custom_call.1
= control target key start
LH: loop header
LB: loop body
LE: loop exit
PB: predicated region body
PF: predicated region fallthrough
CT: control target
= control target key end

     0   :  { %6 = vsyncpa [#allocation3], 0  ;;  %s124_s0 = inlined_call_operand.hbm [shape: f32[1,128], index: 0, kind: input, shape index: {}, may-alias: {0,1}]   ;;  %s125_s1 = inlined_call_operand.hbm [shape: f32[1,128], index: 1, kind: output, shape index: {}, may-alias: {0,1}]  }
   0x1   :  { %7 = vsyncpa [#allocation4], 0  ;;  %s88_s6 = smov [#allocation2]   ;;  %s40_s10 = scalar_lea.hbm %s124_s0, 16 }
   0x2   :  { %s14_s7 = sshll.u32 %s88_s6, 4  ;;  %p41_p0 = scmp.ne.s32.totalorder %s124_s0, %s40_s10  ;;  %s15_s7 = int_to_ptr.vmem [resolvable:$true] %s14_s7 }
   0x3   :  { %p44_p1 = scmp.lt.u32.totalorder %s40_s10, %s124_s0 }
   0x5   :  { %p46_p2 = pnand %p44_p1, %p41_p0 }
   0x7   :  { %49 = shalt.err (!%p46_p2)
}
   0x8   :  { %s50_s15 = scalar_lea.vmem %s15_s7, 16  ;;  %s54_s16 = scalar_lea.vmem %s15_s7, 32 }
   0x9   :  { %p51_p3 = scmp.ne.s32.totalorder %s15_s7, %s50_s15  ;;  %p55_p4 = scmp.lt.s32.totalorder %s15_s7, %s15_s7 }
   0xa   :  { %p56_p5 = scmp.lt.s32.totalorder %s54_s16, %s50_s15 }
   0xc   :  { %p57_p6 = por %p56_p5, %p55_p4 }
   0xe   :  { %p58_p7 = pnand %p57_p6, %p51_p3 }
  0x10   :  { %61 = shalt.err (!%p58_p7)
}
  0x11   :  { %17 = dma.hbm_to_vmem [thread:$0]  %s124_s0, 16, %s15_s7, [#allocation3]  }
  0x12   :  { %84 = dma.done.wait [#allocation3], 16  }
  0x13   :  { %85 = vsyncadd [#allocation3], 4294967280  ;;  %s89_s19 = smov [#allocation5]   ;;  %v21_v0 = vld [vmem:[#allocation2] sm:$0x1] }
  0x14   :  { %s29_s20 = sshll.u32 %s89_s19, 4  ;;  %22 = vst [vmem:[#allocation5] sm:$0x1] %v21_v0  ;;  %s30_s20 = int_to_ptr.vmem [resolvable:$true] %s29_s20 }
  0x15   :  { %s62_s21 = scalar_lea.vmem %s30_s20, 16  ;;  %s66_s22 = scalar_lea.vmem %s30_s20, 32 }
  0x16   :  { %p63_p8 = scmp.ne.s32.totalorder %s30_s20, %s62_s21  ;;  %p67_p9 = scmp.lt.s32.totalorder %s30_s20, %s30_s20 }
  0x17   :  { %p68_p10 = scmp.lt.s32.totalorder %s66_s22, %s62_s21 }
  0x19   :  { %p69_p11 = por %p68_p10, %p67_p9 }
  0x1b   :  { %p70_p12 = pnand %p69_p11, %p63_p8 }
  0x1d   :  { %73 = shalt.err (!%p70_p12)
}
  0x1e   :  { %s74_s25 = scalar_lea.hbm %s125_s1, 16 }
  0x1f   :  { %p75_p13 = scmp.ne.s32.totalorder %s125_s1, %s74_s25  ;;  %p78_p0 = scmp.lt.u32.totalorder %s74_s25, %s125_s1 }
  0x21   :  { %p80_p1 = pnand %p78_p0, %p75_p13 }
  0x23   :  { %83 = shalt.err (!%p80_p1)
}
  0x24   :  { %32 = dma.vmem_to_hbm [thread:$0]  %s30_s20, 16, %s125_s1, [#allocation4]  }
  0x25   :  { %86 = dma.done.wait [#allocation4], 16  }
  0x26   :  { %87 = vsyncadd [#allocation4], 4294967280 }
  0x27   :  { %36 = vsyncpa [#allocation3], 1 }
  0x28   :  { %37 = vsyncpa [#allocation4], 1 }

</bundles_post_ra>
